<compile_context>
chip_gen: v5e
topology: v5e:2x2
jax: 0.10.0
libtpu: 0.0.40
codegen_flags: <defaults>
</compile_context>

<pallas_src>
import jax
import jax.numpy as jnp
from jax.experimental import pallas as pl
from jax.experimental.pallas import tpu as pltpu


IN_FEATURES = 4
OUT_FEATURES = 2
PACK = 64                          # samples packed per row: 64*4 = 256 in-lanes, 64*2 = 128 out-lanes
IN_LANES = PACK * IN_FEATURES      # 256
OUT_LANES = PACK * OUT_FEATURES    # 128
TILE_ROWS = 4096                   # packed rows per grid step (fits default scoped VMEM on v5e/v6e/v7x)
MIN_PALLAS_ROWS = 512              # below this many packed rows, a fused XLA dot is strictly cheaper
MIN_GRID = 4                       # keep >= 4 grid steps so v7x megacore keeps both TCs busy


def _round_up(x, m):
    return -(-x // m) * m


def _packed_linear_kernel(xp_ref, w_ref, b_ref, o_ref):
    # xp_ref: (tile_r, 256) lane-dense input  (64 samples/row, 4 features each)
    # w_ref:  (256, 128)    stacked-compaction weight: block g = [rows 4g..4g+3] x [cols 2g..2g+1] = W^T
    # b_ref:  (1, 128)      bias row: (b0, b1) tiled 64x
    # o_ref:  (tile_r, 128) fully lane-dense output: lanes 2g..2g+1 = logits of sample g of this row
    acc = jnp.dot(xp_ref[...], w_ref[...], preferred_element_type=jnp.float32)
    o_ref[...] = (acc + b_ref[...]).astype(o_ref.dtype)


def pack_params(weight, bias):
    """(2,4) PyTorch-layout weight, (2,) bias -> (256,128) compaction weight + (1,128) bias row."""
    w_t = jnp.asarray(weight, jnp.float32).T                                  # (4, 2)
    w_stack = jnp.kron(jnp.eye(PACK, dtype=jnp.float32), w_t)                 # (256, 128)
    b_row = jnp.tile(jnp.asarray(bias, jnp.float32), PACK).reshape(1, OUT_LANES)
    return w_stack, b_row


def _forward_packed(x, w_stack, b_row, *, tile_rows, vmem_limit_bytes):
    """Pallas path: x (B, 4) f32 -> (B, 2) f32."""
    B = x.shape[0]

    # Pad only to the 64-sample packing granule (NOT to a tile multiple): no input copy
    # when B is already 64-aligned.  The last grid block may be partial — OOB input rows
    # read garbage, OOB output rows are masked, and the trailing [:B] slice drops them.
    Bp = _round_up(B, PACK)
    if Bp != B:
        x = jnp.zeros((Bp, IN_FEATURES), x.dtype).at[:B].set(x)
    R = Bp // PACK
    xp = x.reshape(R, IN_LANES)          # metadata-only reshape of contiguous row-major data

    tile_rows = max(8, (tile_rows // 8) * 8)
    tile_r = max(8, min(tile_rows, _round_up(-(-R // MIN_GRID), 8)))   # (8,128)-aligned block
    n_tiles = -(-R // tile_r)            # cdiv; final block may be partial

    out_packed = pl.pallas_call(
        _packed_linear_kernel,
        out_shape=jax.ShapeDtypeStruct((R, OUT_LANES), jnp.float32),
        grid_spec=pl.GridSpec(
            grid=(n_tiles,),
            in_specs=[
                pl.BlockSpec((tile_r, IN_LANES), lambda i: (i, 0)),     # x tiles stream in
                pl.BlockSpec((IN_LANES, OUT_LANES), lambda i: (0, 0)),  # weight stays resident
                pl.BlockSpec((1, OUT_LANES), lambda i: (0, 0)),         # bias stays resident
            ],
            out_specs=pl.BlockSpec((tile_r, OUT_LANES), lambda i: (i, 0)),
        ),
        compiler_params=pltpu.CompilerParams(
            dimension_semantics=("parallel",),     # v7x: shard the batch grid over 2 TCs
            vmem_limit_bytes=vmem_limit_bytes,     # raise only if you exceed the default tile
        ),
    )(xp, w_stack, b_row)

    # Every output lane is a real logit: unpack is a pure metadata reshape + prefix slice.
    return out_packed.reshape(Bp, OUT_FEATURES)[:B]


def classifier1_forward(x, weight, bias, *, tile_rows=TILE_ROWS,
                        min_rows_for_pallas=MIN_PALLAS_ROWS, vmem_limit_bytes=None):
    """Classifier1.forward: Linear(4, 2) followed by the identity .view — (B,4) -> (B,2)."""
    B = x.shape[0]
    if B == 0:
        return jnp.zeros((0, OUT_FEATURES), jnp.float32)
    xf = x.astype(jnp.float32)
    if -(-B // PACK) < min_rows_for_pallas:
        # Tiny batches: a fused XLA dot beats pad + launch + unpack on every TPU generation.
        out = xf @ jnp.asarray(weight, jnp.float32).T + jnp.asarray(bias, jnp.float32)
    else:
        w_stack, b_row = pack_params(weight, bias)
        out = _forward_packed(xf, w_stack, b_row,
                              tile_rows=tile_rows, vmem_limit_bytes=vmem_limit_bytes)
    # out.view(out.size()[0], -1) — identity reshape for a 2-D result.
    return out.reshape(B, -1)


def make_classifier1(weight, bias, *, tile_rows=TILE_ROWS,
                     min_rows_for_pallas=MIN_PALLAS_ROWS, vmem_limit_bytes=None):
    """Factory: builds the packed weight/bias ONCE and returns a jitted forward(x)."""
    w_stack, b_row = pack_params(weight, bias)
    w_t = jnp.asarray(weight, jnp.float32).T
    b_f = jnp.asarray(bias, jnp.float32)

    @jax.jit
    def forward(x):
        B = x.shape[0]
        if B == 0:
            return jnp.zeros((0, OUT_FEATURES), jnp.float32)
        xf = x.astype(jnp.float32)
        if -(-B // PACK) < min_rows_for_pallas:
            out = xf @ w_t + b_f
        else:
            out = _forward_packed(xf, w_stack, b_row,
                                  tile_rows=tile_rows, vmem_limit_bytes=vmem_limit_bytes)
        return out.reshape(B, -1)

    return forward


def init_params(key):
    """Deterministic init mimicking torch.nn.Linear default (U[-1/sqrt(in), 1/sqrt(in)])."""
    kw, kb = jax.random.split(key)
    bound = 1.0 / (IN_FEATURES ** 0.5)
    weight = jax.random.uniform(
        kw, (OUT_FEATURES, IN_FEATURES), jnp.float32, minval=-bound, maxval=bound
    )
    bias = jax.random.uniform(
        kb, (OUT_FEATURES,), jnp.float32, minval=-bound, maxval=bound
    )
    return weight, bias


if __name__ == "__main__":
    key = jax.random.PRNGKey(0)
    k_x, k_params, k_big, k_mid = jax.random.split(key, 4)

    weight, bias = init_params(k_params)

    # Small demo shape implied by the module's forward: (batch=2, features=4).
    # Exercises the tiny-batch fused-XLA fast path.
    B = 2
    x = jax.random.normal(k_x, (B, IN_FEATURES), jnp.float32)
    out = jax.block_until_ready(classifier1_forward(x, weight, bias))
    ref = x @ weight.T + bias
    assert out.shape == (B, OUT_FEATURES)
    assert jnp.allclose(out, ref, atol=1e-5, rtol=1e-5), "mismatch vs reference (B=2)"

    # Ragged batch forced through the Pallas path: multi-step grid, resident weight,
    # pad-to-64 granule only, partial final block (OOB rows masked).
    B2 = 4097
    x2 = jax.random.normal(k_big, (B2, IN_FEATURES), jnp.float32)
    out2 = jax.block_until_ready(
        classifier1_forward(x2, weight, bias, tile_rows=16, min_rows_for_pallas=1)
    )
    ref2 = x2 @ weight.T + bias
    assert out2.shape == (B2, OUT_FEATURES)
    assert jnp.allclose(out2, ref2, atol=1e-4, rtol=1e-4), "mismatch vs reference (B=4097)"

    # 64-aligned batch through the jitted factory: zero input padding, MIN_GRID-limited tile,
    # fully lane-dense output (no zero lanes, metadata-only unpack).
    B3 = 64 * 1024
    x3 = jax.random.normal(k_mid, (B3, IN_FEATURES), jnp.float32)
    fwd = make_classifier1(weight, bias, min_rows_for_pallas=1)
    out3 = jax.block_until_ready(fwd(x3))
    ref3 = x3 @ weight.T + bias
    assert out3.shape == (B3, OUT_FEATURES)
    assert jnp.allclose(out3, ref3, atol=1e-4, rtol=1e-4), "mismatch vs reference (B=65536)"

    print("KERNEL_OK")
</pallas_src>

<mosaic_0001>
module attributes {stable_mosaic.version = 11 : i64} {
  func.func @_packed_linear_kernel(%arg0: i32, %arg1: memref<16x256xf32, #tpu.memory_space<vmem>>, %arg2: memref<256x128xf32, #tpu.memory_space<vmem>>, %arg3: memref<1x128xf32, #tpu.memory_space<vmem>>, %arg4: memref<16x128xf32, #tpu.memory_space<vmem>>) attributes {dimension_semantics = [#tpu.dimension_semantics<parallel>], iteration_bounds = array<i64: 5>, scalar_prefetch = 0 : i64, scratch_operands = 0 : i64, tpu.core_type = #tpu.core_type<tc>, window_params = [{transform_indices = @transform_0, window_bounds = array<i64: 16, 256>}, {pipeline_mode = #tpu.pipeline_mode<synchronous>, transform_indices = @transform_1, window_bounds = array<i64: 256, 128>}, {pipeline_mode = #tpu.pipeline_mode<synchronous>, transform_indices = @transform_2, window_bounds = array<i64: 1, 128>}, {transform_indices = @transform_3, window_bounds = array<i64: 16, 128>}]} {
    %c0 = arith.constant 0 : index
    %c0_0 = arith.constant 0 : index
    %0 = vector.load %arg1[%c0, %c0_0] : memref<16x256xf32, #tpu.memory_space<vmem>>, vector<16x256xf32>
    %c0_1 = arith.constant 0 : index
    %c0_2 = arith.constant 0 : index
    %1 = vector.load %arg2[%c0_1, %c0_2] : memref<256x128xf32, #tpu.memory_space<vmem>>, vector<256x128xf32>
    %cst = arith.constant dense<0.000000e+00> : vector<16x128xf32>
    %2 = tpu.matmul %0, %1, %cst {dimension_numbers = #tpu.dot_dimension_numbers<[1], [0], [0], [1], [0, 0, 1, 1], [], []>} : vector<16x256xf32>, vector<256x128xf32>, vector<16x128xf32> -> vector<16x128xf32>
    %c0_3 = arith.constant 0 : index
    %c0_4 = arith.constant 0 : index
    %3 = vector.load %arg3[%c0_3, %c0_4] : memref<1x128xf32, #tpu.memory_space<vmem>>, vector<1x128xf32>
    %4 = vector.broadcast %3 : vector<1x128xf32> to vector<16x128xf32>
    %5 = arith.addf %2, %4 : vector<16x128xf32>
    %c0_5 = arith.constant 0 : index
    %c0_6 = arith.constant 0 : index
    %6 = vector.load %arg4[%c0_5, %c0_6] : memref<16x128xf32, #tpu.memory_space<vmem>>, vector<16x128xf32>
    tpu.vector_store %arg4[%c0_5, %c0_6], %5 {strides = array<i32>} : memref<16x128xf32, #tpu.memory_space<vmem>>, vector<16x128xf32>,
    return
  }
  func.func @transform_0(%arg0: i32) -> (i32, i32) {
    %c0_i32 = arith.constant 0 : i32
    %c0_i32_0 = arith.constant 0 : i32
    return %arg0, %c0_i32 : i32, i32
  }
  func.func @transform_1(%arg0: i32) -> (i32, i32) {
    %c0_i32 = arith.constant 0 : i32
    %c0_i32_0 = arith.constant 0 : i32
    %c0_i32_1 = arith.constant 0 : i32
    return %c0_i32, %c0_i32_0 : i32, i32
  }
  func.func @transform_2(%arg0: i32) -> (i32, i32) {
    %c0_i32 = arith.constant 0 : i32
    %c0_i32_0 = arith.constant 0 : i32
    %c0_i32_1 = arith.constant 0 : i32
    return %c0_i32, %c0_i32_0 : i32, i32
  }
  func.func @transform_3(%arg0: i32) -> (i32, i32) {
    %c0_i32 = arith.constant 0 : i32
    %c0_i32_0 = arith.constant 0 : i32
    return %arg0, %c0_i32 : i32, i32
  }
}

</mosaic_0001>

<bundles_post_ra>
// kernel: tpu_custom_call.1
= control target key start
LH: loop header
LB: loop body
LE: loop exit
PB: predicated region body
PF: predicated region fallthrough
CT: control target
= control target key end

     0   :  { %8 = vsyncpa [#allocation3], 0  ;;  %s927_s0 = inlined_call_operand.hbm [shape: f32[65,256], index: 0, kind: input, shape index: {}]   ;;  %s928_s1 = inlined_call_operand.hbm [shape: f32[256,128], index: 1, kind: input, shape index: {}]   ;;  %s929_s2 = inlined_call_operand.vmem [shape: f32[1,128], index: 2, kind: input, shape index: {}]   ;;  %s930_s3 = inlined_call_operand.hbm [shape: f32[65,128], index: 3, kind: output, shape index: {}]  }
   0x1   :  { %10 = vsyncpa [#allocation3 + $0x1], 0 }
   0x2   :  { %11 = vsyncpa [#allocation6], 0 }
   0x3   :  { %12 = vsyncpa [#allocation4], 0 }
   0x4   :  { %14 = vsyncpa [#allocation4 + $0x1], 0  ;;  %s722_s12 = smov 0   ;;  %s724_s13 = smov 0  }
   0x5   :  { %s726_s14 = smov 0   ;;  %s728_s15 = smov 0  }
   0x6 LB: > { %s743_s16 = sadd.s32 4294967295, %s691_s15   ;;  %s422_s17 = sadd.s32 4294967294, %s691_s15   ;;  %s691_s15 = sphi %s728_s15, %s945_s15   ;;  %s687_s14 = sphi %s726_s14, %s944_s14   ;;  %s683_s13 = sphi %s724_s13, %s943_s13   ;;  %s679_s12 = sphi %s722_s12, %s942_s12  }
   0x7   : > { %s747_s18 = sadd.s32 1, %s691_s15   ;;  %s27_s19 = sadd.s32 1, %s687_s14 }
   0x8   : > { %s24_s20 = ssub.s32 %s691_s15, %s747_s18  ;;  %p34_p0 = scmp.ne.s32.totalorder %s687_s14, %s683_s13 }
   0x9   : > { %p25_p1 = scmp.eq.s32.totalorder %s24_s20, 0  ;;  %p35_p2 = scmp.eq.s32.totalorder %s691_s15, 0 }
   0xa   : > { %p40_p3 = scmp.ne.s32.totalorder %s683_s13, %s679_s12  ;;  %p931_p4 = scmp.eq.s32.totalorder %s743_s16, 0 }
   0xb   : > { %s759_s21 = scalar_select %p25_p1, %s687_s14, %s27_s19  }
   0xc   : > { %p761_p5 = por %p35_p2, %p34_p0  ;;  %p767_p6 = por %p931_p4, %p40_p3 }
   0xd   : > { %p106_p7 = scmp.eq.s32.totalorder %s743_s16, 4  ;;  %p112_p8 = scmp.eq.s32.totalorder %s422_s17, 4 }
   0xe   : > { %p423_p9 = scmp.ge.s32.totalorder %s691_s15, 1  ;;  %p119_p10 = scmp.lt.s32.totalorder %s691_s15, 6 }
   0xf   : > { %p774_p11 = por %p106_p7, %p34_p0  ;;  %p778_p12 = por %p112_p8, %p40_p3 }
  0x10   : > { %p782_p13 = pnand %p423_p9, %p119_p10  ;;  %s130_s29 = sshll.u32 %s928_s1, 4  ;;  %s131_s29 = int_to_ptr.hbm [resolvable:$true] %s130_s29 }
  0x11   : > { %s935_s25 = scalar_select %p778_p12, 1, 0 }
  0x12   : > { %p490_p1 = pneg %p782_p13  ;;  %s693_s30 = smov [#allocation5]  }
  0x13   : > { %s132_s4 = sshll.u32 %s693_s30, 4  ;;  %s694_s5 = smov 128   ;;  %s133_s4 = int_to_ptr.vmem [resolvable:$true] %s132_s4 }
  0x14   : > { %p491_p0 = pnand %p490_p1, %p931_p4  ;;  %s695_s6 = smov 8  }
  0x15   : > { %p425_p2 = scmp.ge.s32.totalorder %s691_s15, 5 }
  0x16   : > { %493 = dma.hbm_to_vmem [thread:$0]  (!%p491_p0), %s131_s29, 4096, %s133_s4, [#allocation6], %s694_s5, %s694_s5, %s695_s6  }
  0x17   : > { %145 = sbr.rel (%p425_p2) target bundleno = 64 (0x40), region = 24 }
  0x1c   : > { %148 = sbr.rel (!%p761_p5) target bundleno = 64 (0x40), region = 28  ;;  %s149_s7 = sand.u32 (%p761_p5), 1, %s687_s14  }
  0x1d   : > { %s427_s8 = sshll.u32 (%p761_p5), %s691_s15, 1  ;;  %s426_s9 = sshll.u32 (%p761_p5), %s149_s7, 5 }
  0x1e   : > { %s155_s10 = ssub.s32 (%p761_p5), 9, %s427_s8  ;;  %s801_s20 = scalar_lea.sflag (%p761_p5), [#allocation3], %s149_s7 }
  0x1f   : > { %p156_p3 = scmp.lt.s32.totalorder (%p761_p5), %s155_s10, 2  ;;  %s153_s27 = scalar_lea.vmem (%p761_p5), [#allocation2], %s426_s9 }
  0x21   : > { %s947_s10 = smov (!%p156_p3, %s155_s10), 2 }
  0x22   : > { %s448_s11 = sshll.u32 %s947_s10, 4 }
  0x23   : > { %s160_s17 = ssub.s32 32, %s448_s11 }
  0x24   : > { %s161_s19 = sshll.u32 %s160_s17, 4 }
  0x25   : > { %162 = vsyncadd %s801_s20, %s161_s19  ;;  %p804_p5 = scmp.ne.s32.totalorder %s448_s11, 0  ;;  %s450_s28 = sshll.u32 %s691_s15, 5 }
  0x26   : > { %s166_s4 = scalar_lea.hbm %s927_s0, %s450_s28  ;;  %s812_s5 = sshll.u32 %s153_s27, 4  ;;  %s171_s5 = int_to_ptr.vmem [resolvable:$true] %s812_s5 }
  0x27   : > { %s168_s6 = sshll.u32 %s166_s4, 4  ;;  %s434_s7 = sshll.u32 %s947_s10, 8  ;;  %s815_s6 = int_to_ptr.hbm [resolvable:$true] %s168_s6 }
  0x28   : > { %s571_s8 = sshra.s32 %s815_s6, 4  ;;  %s573_s9 = sshrl.u32 %s434_s7, 4  ;;  %s572_s8 = int_to_ptr.hbm [resolvable:$true] %s571_s8 }
  0x29   : > { %s578_s11 = scalar_lea.hbm %s572_s8, %s573_s9  ;;  %s582_s27 = scalar_lea.hbm %s927_s0, 144 }
  0x2a   : > { %p579_p7 = scmp.ne.s32.totalorder %s572_s8, %s578_s11  ;;  %p583_p10 = scmp.lt.s32.totalorder %s572_s8, %s927_s0 }
  0x2b   : > { %p584_p1 = scmp.lt.s32.totalorder %s582_s27, %s578_s11 }
  0x2c   : > { %p580_p8 = pnand %p579_p7, %p804_p5 }
  0x2d   : > { %p585_p0 = por %p584_p1, %p583_p10 }
  0x2e   : > { %p581_p9 = pneg %p580_p8 }
  0x30   : > { %p586_p2 = pnand %p585_p0, %p581_p9 }
  0x32   : > { %589 = shalt.err (!%p586_p2)
}
  0x33   : > { %s590_s30 = sshra.s32 %s171_s5, 4  ;;  %s696_s17 = smov [#allocation2]   ;;  %s591_s30 = int_to_ptr.vmem [resolvable:$true] %s590_s30 }
  0x34   : > { %s597_s4 = scalar_lea.vmem %s591_s30, %s573_s9  ;;  %s601_s19 = scalar_lea.vmem %s696_s17, 64 }
  0x35   : > { %p598_p3 = scmp.ne.s32.totalorder %s591_s30, %s597_s4  ;;  %p603_p4 = scmp.lt.s32.totalorder %s601_s19, %s597_s4 }
  0x37   : > { %p599_p7 = pnand %p598_p3, %p804_p5 }
  0x39   : > { %p600_p8 = pneg %p599_p7 }
  0x3b   : > { %p605_p12 = pnand %p603_p4, %p600_p8 }
  0x3d   : > { %608 = shalt.err (!%p605_p12)
}
  0x3e   : > { %s697_s8 = smov 256   ;;  %s698_s11 = smov 16  }
  0x3f   : > { %176 = dma.hbm_to_vmem [thread:$0]  (%p804_p5), %s815_s6, %s434_s7, %s171_s5, %s801_s20, %s697_s8, %s697_s8, %s698_s11  }
  0x40 PF: > { %182 = sbr.rel (%p782_p13) target bundleno = 273 (0x111), region = 32  ;;  %s844_s9 = sand.u32 (!%p782_p13), 1, %s683_s13  }
  0x41   : > { %s436_s27 = sshll.u32 (!%p782_p13), %s844_s9, 5  ;;  %s185_s28 = scalar_lea.sflag (!%p782_p13), [#allocation3], %s844_s9 }
  0x42   : > { %s848_s29 = scalar_lea.vmem (!%p782_p13), [#allocation2], %s436_s27 }
  0x45   : > { %666 = dma.done.wait (%p767_p6), %s185_s28, 512  }
  0x46   : > { %668 = vsyncadd (%p767_p6), %s185_s28, 4294966784  ;;  %p938_p4 = scmp.eq.s32.totalorder %s743_s16, 0 }
  0x48   : > { %670 = dma.done.wait (%p938_p4), [#allocation6], 4096   ;;  %p939_p12 = pmov %p938_p4 }
  0x49   : > { %v247_v0 = vld [vmem:[#allocation5 + $0x78] sm:$0xff]  ;;  %v246_v1 = vld [vmem:[#allocation5 + $0x70] sm:$0xff]  ;;  %v245_v4 = vld [vmem:[#allocation5 + $0x68] sm:$0xff]  ;;  %s438_s10 = sshll.u32 %s844_s9, 4  ;;  %s317_s22 = scalar_lea.sflag [#allocation4], %s844_s9 }
  0x4a   : > { %672 = vsyncadd (%p939_p12), [#allocation6], 4294963200  ;;  %v263_v2 = vld [vmem:[#allocation5 + $0xf8] sm:$0xff]  ;;  %452 = vmatpush.msra.mxu2 %v247_v0  ;;  %v262_v3 = vld [vmem:[#allocation5 + $0xf0] sm:$0xff]  ;;  %268 = vmatpush.msra.mxu0 %v247_v0  ;;  %s216_s20 = scalar_lea.vmem [#allocation7], %s438_s10  ;;  %s440_s5 = sshll.u32 (%p774_p11), %s743_s16, 1 }
  0x4b   : > { %468 = vmatpush.msra.mxu3 %v263_v2  ;;  %v261_v5 = vld [vmem:[#allocation5 + $0xe8] sm:$0xff]  ;;  %291 = vmatpush.msra.mxu1 %v263_v2  ;;  %v244_v6 = vld [vmem:[#allocation5 + $0x60] sm:$0xff]  ;;  %v243_v8 = vld [vmem:[#allocation5 + $0x58] sm:$0xff]  ;;  %s325_s6 = ssub.s32 (%p774_p11), 9, %s440_s5 }
  0x4c   : > { %453 = vmatpush.msra.mxu2 %v246_v1  ;;  %269 = vmatpush.msra.mxu0 %v246_v1  ;;  %v260_v7 = vld [vmem:[#allocation5 + $0xe0] sm:$0xff]  ;;  %v259_v9 = vld [vmem:[#allocation5 + $0xd8] sm:$0xff]  ;;  %v242_v10 = vld [vmem:[#allocation5 + $0x50] sm:$0xff]  ;;  %p326_p6 = scmp.lt.s32.totalorder (%p774_p11), %s325_s6, 2 }
  0x4d   : > { %469 = vmatpush.msra.mxu3 %v262_v3  ;;  %292 = vmatpush.msra.mxu1 %v262_v3  ;;  %v258_v11 = vld [vmem:[#allocation5 + $0xd0] sm:$0xff]  ;;  %v241_v12 = vld [vmem:[#allocation5 + $0x48] sm:$0xff]  ;;  %v240_v14 = vld [vmem:[#allocation5 + $0x40] sm:$0xff] }
  0x4e   : > { %454 = vmatpush.msra.mxu2 %v245_v4  ;;  %270 = vmatpush.msra.mxu0 %v245_v4  ;;  %v257_v13 = vld [vmem:[#allocation5 + $0xc8] sm:$0xff]  ;;  %v256_v15 = vld [vmem:[#allocation5 + $0xc0] sm:$0xff]  ;;  %v239_v16 = vld [vmem:[#allocation5 + $0x38] sm:$0xff] }
  0x4f   : > { %470 = vmatpush.msra.mxu3 %v261_v5  ;;  %293 = vmatpush.msra.mxu1 %v261_v5  ;;  %v255_v17 = vld [vmem:[#allocation5 + $0xb8] sm:$0xff]  ;;  %v238_v18 = vld [vmem:[#allocation5 + $0x30] sm:$0xff]  ;;  %v237_v20 = vld [vmem:[#allocation5 + $0x28] sm:$0xff] }
  0x50   : > { %455 = vmatpush.msra.mxu2 %v244_v6  ;;  %271 = vmatpush.msra.mxu0 %v244_v6  ;;  %v254_v19 = vld [vmem:[#allocation5 + $0xb0] sm:$0xff]  ;;  %v253_v21 = vld [vmem:[#allocation5 + $0xa8] sm:$0xff]  ;;  %v236_v22 = vld [vmem:[#allocation5 + $0x20] sm:$0xff] }
  0x51   : > { %471 = vmatpush.msra.mxu3 %v260_v7  ;;  %294 = vmatpush.msra.mxu1 %v260_v7  ;;  %v252_v23 = vld [vmem:[#allocation5 + $0xa0] sm:$0xff]  ;;  %v235_v24 = vld [vmem:[#allocation5 + $0x18] sm:$0xff]  ;;  %v234_v26 = vld [vmem:[#allocation5 + $0x10] sm:$0xff] }
  0x52   : > { %456 = vmatpush.msra.mxu2 %v243_v8  ;;  %272 = vmatpush.msra.mxu0 %v243_v8  ;;  %v251_v25 = vld [vmem:[#allocation5 + $0x98] sm:$0xff]  ;;  %v250_v27 = vld [vmem:[#allocation5 + $0x90] sm:$0xff]  ;;  %v233_v28 = vld [vmem:[#allocation5 + $0x8] sm:$0xff] }
  0x53   : > { %472 = vmatpush.msra.mxu3 %v259_v9  ;;  %295 = vmatpush.msra.mxu1 %v259_v9  ;;  %v249_v29 = vld [vmem:[#allocation5 + $0x88] sm:$0xff]  ;;  %v232_v30 = vld [vmem:[#allocation5] sm:$0xff]  ;;  %v230_v32 = vld [vmem:[%s848_s29 + $0x10] sm:$0xff] }
  0x54   : > { %457 = vmatpush.msra.mxu2 %v242_v10  ;;  %273 = vmatpush.msra.mxu0 %v242_v10  ;;  %v248_v31 = vld [vmem:[#allocation5 + $0x80] sm:$0xff]  ;;  %v231_v33 = vld [vmem:[%s848_s29 + $0x18] sm:$0xff]  ;;  %v229_v35 = vld [vmem:[%s848_s29 + $0x8] sm:$0xff] }
  0x55   : > { %473 = vmatpush.msra.mxu3 %v258_v11  ;;  %296 = vmatpush.msra.mxu1 %v258_v11  ;;  %v228_v34 = vld [vmem:[%s848_s29] sm:$0xff] }
  0x56   : > { %458 = vmatpush.msra.mxu2 %v241_v12  ;;  %274 = vmatpush.msra.mxu0 %v241_v12  ;;  %v540_v36 = vld [vmem:[%s929_s2] ss:$0 sm:$0xff] }
  0x57   : > { %474 = vmatpush.msra.mxu3 %v257_v13  ;;  %297 = vmatpush.msra.mxu1 %v257_v13 }
  0x58   : > { %459 = vmatpush.msra.mxu2 %v240_v14  ;;  %275 = vmatpush.msra.mxu0 %v240_v14 }
  0x59   : > { %475 = vmatpush.msra.mxu3 %v256_v15  ;;  %298 = vmatpush.msra.mxu1 %v256_v15 }
  0x5a   : > { %460 = vmatpush.msra.mxu2 %v239_v16  ;;  %276 = vmatpush.msra.mxu0 %v239_v16 }
  0x5b   : > { %476 = vmatpush.msra.mxu3 %v255_v17  ;;  %299 = vmatpush.msra.mxu1 %v255_v17 }
  0x5c   : > { %461 = vmatpush.msra.mxu2 %v238_v18  ;;  %277 = vmatpush.msra.mxu0 %v238_v18 }
  0x5d   : > { %477 = vmatpush.msra.mxu3 %v254_v19  ;;  %300 = vmatpush.msra.mxu1 %v254_v19 }
  0x5e   : > { %462 = vmatpush.msra.mxu2 %v237_v20  ;;  %278 = vmatpush.msra.mxu0 %v237_v20 }
  0x5f   : > { %478 = vmatpush.msra.mxu3 %v253_v21  ;;  %301 = vmatpush.msra.mxu1 %v253_v21 }
  0x60   : > { %463 = vmatpush.msra.mxu2 %v236_v22  ;;  %279 = vmatpush.msra.mxu0 %v236_v22 }
  0x61   : > { %479 = vmatpush.msra.mxu3 %v252_v23  ;;  %302 = vmatpush.msra.mxu1 %v252_v23 }
  0x62   : > { %464 = vmatpush.msra.mxu2 %v235_v24  ;;  %280 = vmatpush.msra.mxu0 %v235_v24 }
  0x63   : > { %480 = vmatpush.msra.mxu3 %v251_v25  ;;  %303 = vmatpush.msra.mxu1 %v251_v25 }
  0x64   : > { %465 = vmatpush.msra.mxu2 %v234_v26  ;;  %281 = vmatpush.msra.mxu0 %v234_v26 }
  0x65   : > { %481 = vmatpush.msra.mxu3 %v250_v27  ;;  %304 = vmatpush.msra.mxu1 %v250_v27 }
  0x66   : > { %466 = vmatpush.msra.mxu2 %v233_v28  ;;  %282 = vmatpush.msra.mxu0 %v233_v28 }
  0x67   : > { %482 = vmatpush.msra.mxu3 %v249_v29  ;;  %305 = vmatpush.msra.mxu1 %v249_v29 }
  0x68   : > { %467 = vmatpush.msra.mxu2 %v232_v30  ;;  %283 = vmatpush.msra.mxu0 %v232_v30 }
  0x69   : > { %483 = vmatpush.msra.mxu3 %v248_v31  ;;  %287 = vmatmul.f32.vlgmr.msra.gmra.mxu2 %v230_v32 }
  0x6a   : > { %310 = vmatmul.f32.vlgmr.msra.gmra.mxu3 %v231_v33  ;;  %306 = vmatpush.msra.mxu1 %v248_v31 }
  0x6b   : > { %284 = vmatmul.f32.vlgmr.msra.gmra.mxu0 %v228_v34  ;;  %307 = vmatmul.f32.vlgmr.msra.gmra.mxu1 %v229_v35 }
  0xe8   : > { %v285_v37 = vpop.f32.mrf.mxu0  ;;  %v308_v38 = vpop.f32.mrf.mxu1 }
  0xe9   : > { %v286_v39 = vadd.f32 %v540_v36, %v285_v37 }
  0xeb   : > { %v309_v40 = vadd.f32 %v308_v38, %v286_v39 }
  0xec   : > { %v288_v41 = vpop.f32.mrf.mxu2 }
  0xed   : > { %v311_v42 = vpop.f32.mrf.mxu3  ;;  %v289_v43 = vadd.f32 %v540_v36, %v288_v41  ;;  %314 = vst [vmem:[%s216_s20] sm:$0xff] %v309_v40  ;;  %323 = sbr.rel (!%p774_p11) target bundleno = 273 (0x111), region = 44 }
  0xef   : > { %v312_v44 = vadd.f32 %v311_v42, %v289_v43 }
  0xf1   : > { %315 = vst [vmem:[%s216_s20 + $0x8] sm:$0xff] %v312_v44 }
  0xf2   : > { %s949_s6 = smov (!%p326_p6, %s325_s6), 2 }
  0xf3   : > { %s441_s7 = sshll.u32 %s949_s6, 3 }
  0xf4   : > { %s329_s30 = ssub.s32 16, %s441_s7 }
  0xf5   : > { %s330_s4 = sshll.u32 %s329_s30, 4 }
  0xf6   : > { %331 = vsyncadd %s317_s22, %s330_s4  ;;  %p875_p13 = scmp.ne.s32.totalorder %s441_s7, 0  ;;  %s451_s24 = sshll.u32 %s743_s16, 4 }
  0xf7   : > { %s334_s11 = scalar_lea.hbm %s930_s3, %s451_s24  ;;  %s336_s27 = sshll.u32 %s216_s20, 4  ;;  %s883_s27 = int_to_ptr.vmem [resolvable:$true] %s336_s27 }
  0xf8   : > { %s338_s28 = sshll.u32 %s334_s11, 4  ;;  %s445_s29 = sshll.u32 %s949_s6, 7  ;;  %s885_s28 = int_to_ptr.hbm [resolvable:$true] %s338_s28 }
  0xf9   : > { %s610_s23 = sshra.s32 %s883_s27, 4  ;;  %s612_s26 = sshrl.u32 %s445_s29, 4  ;;  %s611_s23 = int_to_ptr.vmem [resolvable:$true] %s610_s23 }
  0xfa   : > { %s617_s10 = scalar_lea.vmem %s611_s23, %s612_s26  ;;  %s699_s16 = smov [#allocation7]  }
  0xfb   : > { %p618_p11 = scmp.ne.s32.totalorder %s611_s23, %s617_s10  ;;  %s621_s5 = scalar_lea.vmem %s699_s16, 32 }
  0xfc   : > { %p623_p10 = scmp.lt.s32.totalorder %s621_s5, %s617_s10 }
  0xfd   : > { %p619_p5 = pnand %p618_p11, %p875_p13 }
  0xff   : > { %p620_p9 = pneg %p619_p5 }
 0x101   : > { %p625_p1 = pnand %p623_p10, %p620_p9 }
 0x103   : > { %628 = shalt.err (!%p625_p1)
}
 0x104   : > { %s629_s20 = sshra.s32 %s885_s28, 4  ;;  %s640_s24 = scalar_lea.hbm %s930_s3, 72  ;;  %s630_s20 = int_to_ptr.hbm [resolvable:$true] %s629_s20 }
 0x105   : > { %s636_s7 = scalar_lea.hbm %s630_s20, %s612_s26  ;;  %p641_p7 = scmp.lt.s32.totalorder %s630_s20, %s930_s3 }
 0x106   : > { %p637_p0 = scmp.ne.s32.totalorder %s630_s20, %s636_s7  ;;  %p642_p8 = scmp.lt.s32.totalorder %s640_s24, %s636_s7 }
 0x108   : > { %p638_p2 = pnand %p637_p0, %p875_p13  ;;  %p643_p4 = por %p642_p8, %p641_p7 }
 0x10a   : > { %p639_p3 = pneg %p638_p2 }
 0x10c   : > { %p644_p12 = pnand %p643_p4, %p639_p3 }
 0x10e   : > { %647 = shalt.err (!%p644_p12)
}
 0x10f   : > { %s700_s11 = smov 128   ;;  %s701_s23 = smov 8  }
 0x110   : > { %344 = dma.vmem_to_hbm [thread:$0]  (%p875_p13), %s883_s27, %s445_s29, %s885_s28, %s317_s22, %s700_s11, %s700_s11, %s701_s23  }
 0x111 PF: > { %p500_p6 = scmp.ge.s32.totalorder %s691_s15, 2  ;;  %s353_s26 = sand.u32 1, %s679_s12  }
 0x112   : > { %p941_p11 = scmp.ne.s32.totalorder %s935_s25, 0  ;;  %s354_s10 = scalar_lea.sflag [#allocation4], %s353_s26 }
 0x114   : > { %p495_p5 = pnand %p500_p6, %p941_p11 }
 0x116   : > { %p496_p9 = pneg %p495_p5 }
 0x118   : > { %674 = dma.done.wait (%p496_p9), %s354_s10, 256  }
 0x119   : > { %676 = vsyncadd (%p496_p9), %s354_s10, 4294967040  ;;  %p17_p10 = scmp.ge.s32.totalorder %s747_s18, 7   ;;  %s942_s12 = smov %s683_s13 }
 0x11a   : > { %s943_s13 = smov %s687_s14  ;;  %s944_s14 = smov %s759_s21 }
 0x11b   : > { %s945_s15 = smov %s747_s18  ;;  %19 = sbr.rel (!%p17_p10) target bundleno = 6 (0x6), region = 81 }
 0x120   :  { %360 = vsyncpa [#allocation3], 1 }
 0x121   :  { %362 = vsyncpa [#allocation3 + $0x1], 1 }
 0x122   :  { %363 = vsyncpa [#allocation6], 1 }
 0x123   :  { %364 = vsyncpa [#allocation4], 1 }
 0x124   :  { %366 = vsyncpa [#allocation4 + $0x1], 1 }

</bundles_post_ra>
